<compile_context>
chip_gen: v7x
topology: tpu7x:2x2x1
jax: 0.10.0
libtpu: 0.0.40
codegen_flags: <defaults>
</compile_context>

<pallas_src>
import functools
import math

import jax
import jax.numpy as jnp
from jax.experimental import pallas as pl
from jax.experimental.pallas import tpu as pltpu

_LANE = 128
_TILE_BYTES_TARGET = 2 * 1024 * 1024  # ~2 MiB/tile -> ~8 MiB double-buffered in+out


def _round_up(v: int, m: int) -> int:
    return ((v + m - 1) // m) * m


def _choose_tiles(B: int, N: int, itemsize: int):
    """Pick (tile_b, tile_n) for a (B, N) lane-dense stream.

    tile_n is a multiple of 128 (ragged final block is masked by Pallas).
    tile_b is either B (full dim -> always legal) or a multiple of the dtype's
    sublane packing granularity (8 for 4-byte, 16 for 2-byte, 32 for 1-byte).
    """
    sub = max(8, 32 // itemsize)                 # sublane granularity incl. packing
    n_lanes = _round_up(N, _LANE)                # row length rounded up to lanes
    target_elems = max(sub * _LANE, _TILE_BYTES_TARGET // itemsize)

    # --- rows per tile -------------------------------------------------------
    if B <= sub:
        tile_b = B                               # block dim == full dim: legal
    else:
        rows_wanted = max(1, target_elems // n_lanes)
        if rows_wanted >= B:
            tile_b = B
        else:
            tile_b = max(sub, (rows_wanted // sub) * sub)

    # --- lanes per tile ------------------------------------------------------
    per_row = max(_LANE, ((target_elems // tile_b) // _LANE) * _LANE)
    tile_n = min(n_lanes, per_row)
    return tile_b, tile_n


def _drop_path_kernel(scale_ref, x_ref, o_ref):
    # scale_ref: (TILE_B, 1) f32, per-sample scale (0.0 or 1/keep_prob).
    # x_ref / o_ref: (TILE_B, TILE_N) tile of the lane-dense (B, N) stream.
    # Multiply in f32 (VPU has huge slack in a mem-bound kernel; v5e has no
    # bf16 VALU anyway), cast back to the output dtype on store.
    o_ref[...] = (x_ref[...].astype(jnp.float32) * scale_ref[...]).astype(o_ref.dtype)


def drop_path_pallas(x, key, drop_prob: float = 0.0, training: bool = False,
                     donate_x: bool = False):
    """Matches makani drop_path(x, drop_prob, training) semantics."""
    if drop_prob == 0.0 or not training:
        return x
    if not (0.0 <= drop_prob < 1.0):
        raise ValueError(f"drop_prob must be in [0, 1), got {drop_prob}")

    keep_prob = 1.0 - drop_prob
    B = x.shape[0]
    N = math.prod(x.shape[1:])
    itemsize = jnp.dtype(x.dtype).itemsize

    # Per-sample Bernoulli keep mask: floor(keep_prob + U) in {0, 1}; fold the
    # 1/keep_prob scale in so the kernel is a single broadcast multiply.
    u = jax.random.uniform(key, (B,), dtype=jnp.float32)
    mask = jnp.floor(keep_prob + u)                      # (B,) in {0., 1.}
    scale = (mask * (1.0 / keep_prob)).reshape(B, 1).astype(jnp.float32)

    # Lane-dense 2-D view; reshape of a contiguous array is free (no HBM pass).
    x2 = x.reshape(B, N)

    tile_b, tile_n = _choose_tiles(B, N, itemsize)
    grid = (pl.cdiv(B, tile_b), pl.cdiv(N, tile_n))

    out2 = pl.pallas_call(
        _drop_path_kernel,
        out_shape=jax.ShapeDtypeStruct((B, N), x.dtype),
        grid=grid,
        in_specs=[
            pl.BlockSpec((tile_b, 1), lambda i, j: (i, 0)),        # scale
            pl.BlockSpec((tile_b, tile_n), lambda i, j: (i, j)),   # x
        ],
        out_specs=pl.BlockSpec((tile_b, tile_n), lambda i, j: (i, j)),
        compiler_params=pltpu.CompilerParams(
            dimension_semantics=("parallel", "parallel"),
        ),
        cost_estimate=pl.CostEstimate(
            flops=B * N,
            transcendentals=0,
            bytes_accessed=2 * B * N * itemsize + B * 4,
        ),
        input_output_aliases=({1: 0} if donate_x else {}),
    )(scale, x2)

    return out2.reshape(x.shape)


class DropPath:
    """Drop paths (Stochastic Depth) per sample."""

    def __init__(self, drop_prob=None):
        self.drop_prob = drop_prob if drop_prob is not None else 0.0
        self.training = True

    def __call__(self, x, key):
        return drop_path_pallas(x, key, self.drop_prob, self.training)


if __name__ == "__main__":
    key = jax.random.PRNGKey(0)
    k_x, k_drop = jax.random.split(key)

    B, C, H, W = 2, 4, 16, 16
    x = jax.random.normal(k_x, (B, C, H, W), dtype=jnp.float32)

    drop_prob = 0.3
    keep_prob = 1.0 - drop_prob
    module = DropPath(drop_prob)

    # pure-JAX reference mask (same randoms, PyTorch-style math)
    u = jax.random.uniform(k_drop, (B,), dtype=jnp.float32)
    mask = jnp.floor(keep_prob + u).reshape(B, 1, 1, 1)

    # --- training mode: stochastic depth applied (128-aligned rows) ----------
    out = jax.block_until_ready(module(x, k_drop))
    ref = x / keep_prob * mask
    assert out.shape == x.shape and out.dtype == x.dtype
    assert jnp.allclose(out, ref, atol=1e-6, rtol=1e-5), "mismatch vs reference"

    # --- non-128-aligned per-sample size (ragged last block, no padding) -----
    x2 = jax.random.normal(k_x, (B, 3, 7, 10), dtype=jnp.float32)
    out2 = jax.block_until_ready(module(x2, k_drop))
    ref2 = x2 / keep_prob * mask
    assert out2.shape == x2.shape and out2.dtype == x2.dtype
    assert jnp.allclose(out2, ref2, atol=1e-6, rtol=1e-5), "mismatch (ragged)"

    # --- bf16 path: f32 compute, cast on store --------------------------------
    x3 = jax.random.normal(k_x, (B, 8, 16, 16), dtype=jnp.bfloat16)
    out3 = jax.block_until_ready(module(x3, k_drop))
    ref3 = (x3.astype(jnp.float32) / keep_prob * mask).astype(jnp.bfloat16)
    assert out3.shape == x3.shape and out3.dtype == x3.dtype
    assert jnp.allclose(out3.astype(jnp.float32), ref3.astype(jnp.float32),
                        atol=1e-2, rtol=2e-2), "mismatch (bf16)"

    # --- eval mode: identity ---------------------------------------------------
    module.training = False
    out_eval = jax.block_until_ready(module(x, k_drop))
    assert jnp.array_equal(out_eval, x)

    print("KERNEL_OK")
</pallas_src>

<mosaic_0001>
module attributes {stable_mosaic.version = 11 : i64} {
  func.func @_drop_path_kernel(%arg0: i32, %arg1: i32, %arg2: memref<2x1xf32, #tpu.memory_space<vmem>>, %arg3: memref<2x1024xf32, #tpu.memory_space<vmem>>, %arg4: memref<2x1024xf32, #tpu.memory_space<vmem>>) attributes {dimension_semantics = [#tpu.dimension_semantics<parallel>, #tpu.dimension_semantics<parallel>], iteration_bounds = array<i64: 1, 1>, scalar_prefetch = 0 : i64, scratch_operands = 0 : i64, tpu.core_type = #tpu.core_type<tc>, window_params = [{transform_indices = @transform_0, window_bounds = array<i64: 2, 1>}, {transform_indices = @transform_1, window_bounds = array<i64: 2, 1024>}, {transform_indices = @transform_2, window_bounds = array<i64: 2, 1024>}]} {
    %c0 = arith.constant 0 : index
    %c0_0 = arith.constant 0 : index
    %0 = vector.load %arg3[%c0, %c0_0] : memref<2x1024xf32, #tpu.memory_space<vmem>>, vector<2x1024xf32>
    %c0_1 = arith.constant 0 : index
    %c0_2 = arith.constant 0 : index
    %1 = vector.load %arg2[%c0_1, %c0_2] : memref<2x1xf32, #tpu.memory_space<vmem>>, vector<2x1xf32>
    %2 = vector.broadcast %1 : vector<2x1xf32> to vector<2x1024xf32>
    %3 = arith.mulf %0, %2 : vector<2x1024xf32>
    %c0_3 = arith.constant 0 : index
    %c0_4 = arith.constant 0 : index
    %4 = vector.load %arg4[%c0_3, %c0_4] : memref<2x1024xf32, #tpu.memory_space<vmem>>, vector<2x1024xf32>
    tpu.vector_store %arg4[%c0_3, %c0_4], %3 {strides = array<i32>} : memref<2x1024xf32, #tpu.memory_space<vmem>>, vector<2x1024xf32>,
    return
  }
  func.func @transform_0(%arg0: i32, %arg1: i32) -> (i32, i32) {
    %c0_i32 = arith.constant 0 : i32
    %c0_i32_0 = arith.constant 0 : i32
    return %arg0, %c0_i32 : i32, i32
  }
  func.func @transform_1(%arg0: i32, %arg1: i32) -> (i32, i32) {
    %c0_i32 = arith.constant 0 : i32
    return %arg0, %arg1 : i32, i32
  }
  func.func @transform_2(%arg0: i32, %arg1: i32) -> (i32, i32) {
    %c0_i32 = arith.constant 0 : i32
    return %arg0, %arg1 : i32, i32
  }
}

</mosaic_0001>

<bundles_post_ra>
// kernel: tpu_custom_call.1
= control target key start
LH: loop header
LB: loop body
LE: loop exit
PB: predicated region body
PF: predicated region fallthrough
CT: control target
= control target key end

     0   :  { %7 = vsyncpa [#allocation3], 0  ;;  %s157_s0 = inlined_call_operand.vmem [shape: f32[2,1], index: 0, kind: input, shape index: {}]   ;;  %s158_s1 = inlined_call_operand.hbm [shape: f32[2,1024], index: 1, kind: input, shape index: {}]   ;;  %s159_s2 = inlined_call_operand.hbm [shape: f32[2,1024], index: 2, kind: output, shape index: {}]  }
   0x1   :  { %8 = vsyncpa [#allocation4], 0  ;;  %s111_s9 = smov [#allocation2]   ;;  %s63_s13 = scalar_lea.hbm %s158_s1, 256 }
   0x2   :  { %s17_s10 = sshll.u32 %s111_s9, 4  ;;  %p64_p0 = scmp.ne.s32.totalorder %s158_s1, %s63_s13  ;;  %s18_s10 = int_to_ptr.vmem [resolvable:$true] %s17_s10 }
   0x3   :  { %p67_p1 = scmp.lt.u32.totalorder %s63_s13, %s158_s1 }
   0x5   :  { %p69_p2 = pnand %p67_p1, %p64_p0 }
   0x7   :  { %72 = shalt.err (!%p69_p2)
}
   0x8   :  { %s73_s18 = scalar_lea.vmem %s18_s10, 256  ;;  %p78_p4 = scmp.lt.s32.totalorder %s18_s10, %s18_s10 }
   0x9   :  { %p74_p3 = scmp.ne.s32.totalorder %s18_s10, %s73_s18  ;;  %p79_p5 = scmp.lt.s32.totalorder %s73_s18, %s73_s18 }
   0xb   :  { %p80_p6 = por %p79_p5, %p78_p4 }
   0xd   :  { %p81_p7 = pnand %p80_p6, %p74_p3 }
   0xf   :  { %84 = shalt.err (!%p81_p7)
}
  0x10   :  { %20 = dma.hbm_to_vmem [thread:$0]  %s158_s1, 256, %s18_s10, [#allocation3]  }
  0x11   :  { %107 = dma.done.wait [#allocation3], 256  }
  0x12   :  { %108 = vsyncadd [#allocation3], 4294967040  ;;  %v112_v0 = vmov 0   ;;  %v26_v1 = vld [vmem:[%s157_s0] sm:$0x3]  ;;  %v34_v4 = vlaneseq  ;;  %v25_v10 = vld [vmem:[#allocation2 + $0x8] sm:$0xff] }
  0x13   :  { %62 = vset.pattern.permute.xlu0 %v112_v0  ;;  %v113_v2 = vmov 269488144   ;;  %v24_v9 = vld [vmem:[#allocation2] sm:$0xff]  ;;  %s114_s23 = smov [#allocation5]  }
  0x14   :  { %29 = vperm.xlu0 %62, %v26_v1   ;;  %v32_v3 = vunpack.c.l.s4 %v113_v2  ;;  %v35_v6 = vshrl.u32 %v34_v4, 7  ;;  %s49_s1 = sshll.u32 %s114_s23, 4  ;;  %s50_s1 = int_to_ptr.vmem [resolvable:$true] %s49_s1 }
  0x15   :  { %s85_s24 = scalar_lea.vmem %s50_s1, 256  ;;  %p90_p9 = scmp.lt.s32.totalorder %s50_s1, %s50_s1 }
  0x16   :  { %v33_v5 = vunpack.c.0.s8 %v32_v3  ;;  %p86_p8 = scmp.ne.s32.totalorder %s50_s1, %s85_s24  ;;  %p91_p10 = scmp.lt.s32.totalorder %s85_s24, %s85_s24 }
  0x18   :  { %v36_v7 = vsub.s32 %v33_v5, %v35_v6  ;;  %p92_p11 = por %p91_p10, %p90_p9 }
  0x1a   :  { %p93_p12 = pnand %p92_p11, %p86_p8 }
  0x93   :  { %v30_v8 = vpop.permute.xlu0 %29 }
  0x94   :  { %v37_v11 = vrot.slane %v30_v8, %v36_v7 }
  0x96   :  { %v39_v12 = vmul.f32 %v37_v11, %v24_v9  ;;  %v40_v13 = vmul.f32 %v37_v11, %v25_v10 }
  0x98   :  { %41 = vst [vmem:[#allocation5] sm:$0xff] %v39_v12  ;;  %42 = vst [vmem:[#allocation5 + $0x8] sm:$0xff] %v40_v13 }
  0x99   :  { %96 = shalt.err (!%p93_p12)
}
  0x9a   :  { %s97_s26 = scalar_lea.hbm %s159_s2, 256 }
  0x9b   :  { %p98_p13 = scmp.ne.s32.totalorder %s159_s2, %s97_s26  ;;  %p101_p0 = scmp.lt.u32.totalorder %s97_s26, %s159_s2 }
  0x9d   :  { %p103_p1 = pnand %p101_p0, %p98_p13 }
  0x9f   :  { %106 = shalt.err (!%p103_p1)
}
  0xa0   :  { %52 = dma.vmem_to_hbm [thread:$0]  %s50_s1, 256, %s159_s2, [#allocation4]  }
  0xa1   :  { %109 = dma.done.wait [#allocation4], 256  }
  0xa2   :  { %110 = vsyncadd [#allocation4], 4294967040 }
  0xa3   :  { %56 = vsyncpa [#allocation3], 1 }
  0xa4   :  { %57 = vsyncpa [#allocation4], 1 }

</bundles_post_ra>
